<compile_context>
chip_gen: v5e
topology: v5e:2x2
jax: 0.10.0
libtpu: 0.0.40
codegen_flags: <defaults>
</compile_context>

<pallas_src>
import jax
import jax.numpy as jnp
from jax.experimental import pallas as pl
from jax.experimental.pallas import tpu as pltpu

CIN, COUT, KH, KW = 3, 10, 10, 10
PAD = 1
BN_EPS = 1e-5


def _conv_act_bn_kernel(w_ref, p_ref, b_ref, o_ref):
    # w_ref: [COUT, K]  bf16 flattened conv weight
    # p_ref: [K, M]     bf16 im2col patches (M on the lane axis)
    # b_ref: [COUT, 1]  f32 conv bias
    # o_ref: [COUT, M]  f32 output (lane-dense stores)
    conv = jnp.dot(w_ref[...], p_ref[...],
                   preferred_element_type=jnp.float32) + b_ref[...]
    # x2 = 3 + conv ; x3 = clamp_min(x2, 0) ; x4 = clamp_max(x3, 6)
    gate = jnp.clip(conv + 3.0, 0.0, 6.0)
    # x5 = conv * x4 ; x6 = x5 / 6
    x6 = conv * gate * (1.0 / 6.0)
    # BatchNorm2d (training mode): per-channel mean/var over all (N, OH, OW)
    # positions, i.e. over the lane axis of the [COUT, M] slab. gamma=1, beta=0.
    mean = jnp.mean(x6, axis=1, keepdims=True)
    centered = x6 - mean
    var = jnp.mean(centered * centered, axis=1, keepdims=True)
    o_ref[...] = centered * jax.lax.rsqrt(var + BN_EPS)


def model_forward(x, weight, bias):
    # x: [N, 3, H, W] f32, weight: [COUT, CIN, KH, KW] f32, bias: [COUT] f32
    n, cin, h, w = x.shape
    oh = h + 2 * PAD - KH + 1
    ow = w + 2 * PAD - KW + 1
    k = cin * KH * KW
    m = n * oh * ow

    # Single XLA op for patch extraction; output channel ordering is
    # (cin, kh, kw) -> identical to weight.reshape(COUT, CIN*KH*KW).
    patches = jax.lax.conv_general_dilated_patches(
        x, filter_shape=(KH, KW), window_strides=(1, 1),
        padding=((PAD, PAD), (PAD, PAD)),
        dimension_numbers=('NCHW', 'OIHW', 'NCHW'))       # [N, K, OH, OW]
    p_km = patches.transpose(1, 0, 2, 3).reshape(k, m).astype(jnp.bfloat16)
    w_ck = weight.reshape(COUT, k).astype(jnp.bfloat16)   # [COUT, K]
    b_c1 = bias.reshape(COUT, 1).astype(jnp.float32)      # [COUT, 1]

    out_cm = pl.pallas_call(
        _conv_act_bn_kernel,
        out_shape=jax.ShapeDtypeStruct((COUT, m), jnp.float32),
        grid=(1,),
        in_specs=[
            pl.BlockSpec((COUT, k), lambda i: (0, 0)),
            pl.BlockSpec((k, m), lambda i: (0, 0)),
            pl.BlockSpec((COUT, 1), lambda i: (0, 0)),
        ],
        out_specs=pl.BlockSpec((COUT, m), lambda i: (0, 0)),
        compiler_params=pltpu.CompilerParams(
            dimension_semantics=("arbitrary",)),
    )(w_ck, p_km, b_c1)

    # [COUT, M] -> [COUT, N, OH, OW] -> NCHW (tiny, ~6.5 KB).
    return out_cm.reshape(COUT, n, oh, ow).transpose(1, 0, 2, 3)


if __name__ == "__main__":
    key = jax.random.PRNGKey(0)
    kx, kw_, kb = jax.random.split(key, 3)

    # Deterministic synthetic parameters (not a checkpoint load).
    weight = jax.random.normal(kw_, (COUT, CIN, KH, KW), dtype=jnp.float32) * 0.05
    bias = jax.random.normal(kb, (COUT,), dtype=jnp.float32) * 0.05

    # Input: N=2, C=3, H=W=16  ->  conv output spatial 9x9.
    x = jax.random.normal(kx, (2, CIN, 16, 16), dtype=jnp.float32)

    out = model_forward(x, weight, bias)
    jax.block_until_ready(out)
    assert out.shape == (2, COUT, 9, 9), out.shape
    print("KERNEL_OK")
</pallas_src>

<mosaic_0001>
module attributes {stable_mosaic.version = 11 : i64} {
  func.func @_conv_act_bn_kernel(%arg0: i32, %arg1: memref<10x300xbf16, #tpu.memory_space<vmem>>, %arg2: memref<300x162xbf16, #tpu.memory_space<vmem>>, %arg3: memref<10x1xf32, #tpu.memory_space<vmem>>, %arg4: memref<10x162xf32, #tpu.memory_space<vmem>>) attributes {dimension_semantics = [#tpu.dimension_semantics<arbitrary>], iteration_bounds = array<i64: 1>, scalar_prefetch = 0 : i64, scratch_operands = 0 : i64, tpu.core_type = #tpu.core_type<tc>, window_params = [{pipeline_mode = #tpu.pipeline_mode<synchronous>, transform_indices = @transform_0, window_bounds = array<i64: 10, 300>}, {pipeline_mode = #tpu.pipeline_mode<synchronous>, transform_indices = @transform_1, window_bounds = array<i64: 300, 162>}, {pipeline_mode = #tpu.pipeline_mode<synchronous>, transform_indices = @transform_2, window_bounds = array<i64: 10, 1>}, {pipeline_mode = #tpu.pipeline_mode<synchronous>, transform_indices = @transform_3, window_bounds = array<i64: 10, 162>}]} {
    %c0 = arith.constant 0 : index
    %c0_0 = arith.constant 0 : index
    %0 = vector.load %arg1[%c0, %c0_0] : memref<10x300xbf16, #tpu.memory_space<vmem>>, vector<10x300xbf16>
    %c0_1 = arith.constant 0 : index
    %c0_2 = arith.constant 0 : index
    %1 = vector.load %arg2[%c0_1, %c0_2] : memref<300x162xbf16, #tpu.memory_space<vmem>>, vector<300x162xbf16>
    %cst = arith.constant dense<0.000000e+00> : vector<10x162xf32>
    %2 = tpu.matmul %0, %1, %cst {dimension_numbers = #tpu.dot_dimension_numbers<[1], [0], [0], [1], [0, 0, 1, 1], [], []>} : vector<10x300xbf16>, vector<300x162xbf16>, vector<10x162xf32> -> vector<10x162xf32>
    %c0_3 = arith.constant 0 : index
    %c0_4 = arith.constant 0 : index
    %3 = vector.load %arg3[%c0_3, %c0_4] : memref<10x1xf32, #tpu.memory_space<vmem>>, vector<10x1xf32>
    %4 = vector.broadcast %3 : vector<10x1xf32> to vector<10x162xf32>
    %5 = arith.addf %2, %4 : vector<10x162xf32>
    %cst_5 = arith.constant 3.000000e+00 : f32
    %6 = vector.broadcast %cst_5 : f32 to vector<10x162xf32>
    %7 = arith.addf %5, %6 : vector<10x162xf32>
    %cst_6 = arith.constant 0.000000e+00 : f32
    %cst_7 = arith.constant 6.000000e+00 : f32
    %8 = vector.broadcast %cst_6 : f32 to vector<10x162xf32>
    %9 = arith.maximumf %8, %7 : vector<10x162xf32>
    %10 = vector.broadcast %cst_7 : f32 to vector<10x162xf32>
    %11 = arith.minimumf %10, %9 : vector<10x162xf32>
    %12 = arith.mulf %5, %11 : vector<10x162xf32>
    %cst_8 = arith.constant 0.166666672 : f32
    %13 = vector.broadcast %cst_8 : f32 to vector<10x162xf32>
    %14 = arith.mulf %12, %13 : vector<10x162xf32>
    %cst_9 = arith.constant dense<0.000000e+00> : vector<10xf32>
    %15 = vector.multi_reduction <add>, %14, %cst_9 [1] : vector<10x162xf32> to vector<10xf32>
    %16 = vector.shape_cast %15 : vector<10xf32> to vector<10x1xf32>
    %cst_10 = arith.constant 1.620000e+02 : f32
    %17 = vector.broadcast %cst_10 : f32 to vector<10x1xf32>
    %18 = arith.divf %16, %17 : vector<10x1xf32>
    %19 = vector.broadcast %18 : vector<10x1xf32> to vector<10x162xf32>
    %20 = arith.subf %14, %19 : vector<10x162xf32>
    %21 = arith.mulf %20, %20 : vector<10x162xf32>
    %cst_11 = arith.constant dense<0.000000e+00> : vector<10xf32>
    %22 = vector.multi_reduction <add>, %21, %cst_11 [1] : vector<10x162xf32> to vector<10xf32>
    %23 = vector.shape_cast %22 : vector<10xf32> to vector<10x1xf32>
    %cst_12 = arith.constant 1.620000e+02 : f32
    %24 = vector.broadcast %cst_12 : f32 to vector<10x1xf32>
    %25 = arith.divf %23, %24 : vector<10x1xf32>
    %cst_13 = arith.constant 9.99999974E-6 : f32
    %26 = vector.broadcast %cst_13 : f32 to vector<10x1xf32>
    %27 = arith.addf %25, %26 : vector<10x1xf32>
    %28 = math.rsqrt %27 : vector<10x1xf32>
    %29 = vector.broadcast %28 : vector<10x1xf32> to vector<10x162xf32>
    %30 = arith.mulf %20, %29 : vector<10x162xf32>
    %c0_14 = arith.constant 0 : index
    %c0_15 = arith.constant 0 : index
    %31 = vector.load %arg4[%c0_14, %c0_15] : memref<10x162xf32, #tpu.memory_space<vmem>>, vector<10x162xf32>
    tpu.vector_store %arg4[%c0_14, %c0_15], %30 {strides = array<i32>} : memref<10x162xf32, #tpu.memory_space<vmem>>, vector<10x162xf32>,
    return
  }
  func.func @transform_0(%arg0: i32) -> (i32, i32) {
    %c0_i32 = arith.constant 0 : i32
    %c0_i32_0 = arith.constant 0 : i32
    %c0_i32_1 = arith.constant 0 : i32
    return %c0_i32, %c0_i32_0 : i32, i32
  }
  func.func @transform_1(%arg0: i32) -> (i32, i32) {
    %c0_i32 = arith.constant 0 : i32
    %c0_i32_0 = arith.constant 0 : i32
    %c0_i32_1 = arith.constant 0 : i32
    return %c0_i32, %c0_i32_0 : i32, i32
  }
  func.func @transform_2(%arg0: i32) -> (i32, i32) {
    %c0_i32 = arith.constant 0 : i32
    %c0_i32_0 = arith.constant 0 : i32
    %c0_i32_1 = arith.constant 0 : i32
    return %c0_i32, %c0_i32_0 : i32, i32
  }
  func.func @transform_3(%arg0: i32) -> (i32, i32) {
    %c0_i32 = arith.constant 0 : i32
    %c0_i32_0 = arith.constant 0 : i32
    %c0_i32_1 = arith.constant 0 : i32
    return %c0_i32, %c0_i32_0 : i32, i32
  }
}

</mosaic_0001>

<bundles_post_ra>
// kernel: tpu_custom_call.1
= control target key start
LH: loop header
LB: loop body
LE: loop exit
PB: predicated region body
PF: predicated region fallthrough
CT: control target
= control target key end

     0   :  { %vm277_vm0 = vcmask 1045504   ;;  %vm273_vm1 = vcmask 359424   ;;  %s1017_s0 = inlined_call_operand.vmem [shape: bf16[10,300], index: 0, kind: input, shape index: {}]   ;;  %s1018_s1 = inlined_call_operand.vmem [shape: bf16[300,162], index: 1, kind: input, shape index: {}]   ;;  %s1019_s2 = inlined_call_operand.vmem [shape: f32[10,1], index: 2, kind: input, shape index: {}]   ;;  %s1020_s3 = inlined_call_operand.hbm [shape: f32[10,162], index: 3, kind: output, shape index: {}]  }
   0x1   :  { %v546_v0 = vld [vmem:[%s1018_s1 + $0x70] sm:$0xf]  ;;  %v660_v1 = vld [vmem:[%s1018_s1 + $0x74] sm:$0xf0]  ;;  %v659_v2 = vld [vmem:[%s1018_s1 + $0x74] sm:$0xf] }
   0x2   :  { %v547_v3 = vor.u32 %v660_v1, %v546_v0  ;;  %v548_v4 = vld [vmem:[%s1018_s1 + $0x78] sm:$0xf0]  ;;  %v634_v5 = vld [vmem:[%s1018_s1 + $0x120] sm:$0xf]  ;;  %v682_v6 = vld [vmem:[%s1018_s1 + $0x124] sm:$0x30] }
   0x3   :  { %v551_v7 = vor.u32 %v659_v2, %v548_v4  ;;  %v635_v8 = vor.u32 %v682_v6, %v634_v5  ;;  %v610_v9 = vld [vmem:[%s1018_s1 + $0xf0] sm:$0xf]  ;;  %v676_v10 = vld [vmem:[%s1018_s1 + $0xf4] sm:$0xf0]  ;;  %v538_v12 = vld [vmem:[%s1018_s1 + $0x60] sm:$0xf] }
   0x4   :  { %284 = vmatpush.bf16.msra.mxu0 %v547_v3  ;;  %v611_v11 = vor.u32 %v676_v10, %v610_v9  ;;  %v658_v13 = vld [vmem:[%s1018_s1 + $0x64] sm:$0xf0]  ;;  %v657_v14 = vld [vmem:[%s1018_s1 + $0x64] sm:$0xf]  ;;  %v540_v17 = vld [vmem:[%s1018_s1 + $0x68] sm:$0xf0] }
   0x5   :  { %326 = vmatpush.bf16.msra.mxu3 %v551_v7  ;;  %v279_v15 = vsel %vm277_vm0, %v635_v8, 0  ;;  %v539_v16 = vor.u32 %v658_v13, %v538_v12  ;;  %v626_v18 = vld [vmem:[%s1018_s1 + $0x110] sm:$0xf]  ;;  %v543_v19 = vor.u32 %v657_v14, %v540_v17  ;;  %v680_v20 = vld [vmem:[%s1018_s1 + $0x114] sm:$0xf0] }
   0x6   :  { %317 = vmatpush.bf16.msra.mxu2 %v279_v15  ;;  %298 = vmatpush.bf16.msra.mxu1 %v611_v11  ;;  %v602_v21 = vld [vmem:[%s1018_s1 + $0xe0] sm:$0xf]  ;;  %v674_v22 = vld [vmem:[%s1018_s1 + $0xe4] sm:$0xf0]  ;;  %v627_v23 = vor.u32 %v680_v20, %v626_v18  ;;  %v530_v25 = vld [vmem:[%s1018_s1 + $0x50] sm:$0xf] }
   0x7   :  { %v603_v24 = vor.u32 %v674_v22, %v602_v21  ;;  %v656_v26 = vld [vmem:[%s1018_s1 + $0x54] sm:$0xf0]  ;;  %v655_v27 = vld [vmem:[%s1018_s1 + $0x54] sm:$0xf]  ;;  %v532_v29 = vld [vmem:[%s1018_s1 + $0x58] sm:$0xf0] }
   0x8   :  { %285 = vmatpush.bf16.msra.mxu0 %v539_v16  ;;  %v531_v28 = vor.u32 %v656_v26, %v530_v25  ;;  %v618_v30 = vld [vmem:[%s1018_s1 + $0x100] sm:$0xf]  ;;  %v678_v31 = vld [vmem:[%s1018_s1 + $0x104] sm:$0xf0]  ;;  %v535_v32 = vor.u32 %v655_v27, %v532_v29  ;;  %v594_v33 = vld [vmem:[%s1018_s1 + $0xd0] sm:$0xf] }
   0x9   :  { %327 = vmatpush.bf16.msra.mxu3 %v543_v19  ;;  %v672_v34 = vld [vmem:[%s1018_s1 + $0xd4] sm:$0xf0]  ;;  %v675_v35 = vld [vmem:[%s1018_s1 + $0xf4] sm:$0xf]  ;;  %v619_v36 = vor.u32 %v678_v31, %v618_v30  ;;  %v612_v38 = vld [vmem:[%s1018_s1 + $0xf8] sm:$0xf0] }
   0xa   :  { %318 = vmatpush.bf16.msra.mxu2 %v627_v23  ;;  %299 = vmatpush.bf16.msra.mxu1 %v603_v24  ;;  %v595_v37 = vor.u32 %v672_v34, %v594_v33  ;;  %v522_v39 = vld [vmem:[%s1018_s1 + $0x40] sm:$0xf]  ;;  %v654_v40 = vld [vmem:[%s1018_s1 + $0x44] sm:$0xf0]  ;;  %v615_v41 = vor.u32 %v675_v35, %v612_v38  ;;  %v653_v42 = vld [vmem:[%s1018_s1 + $0x44] sm:$0xf] }
   0xb   :  { %v524_v43 = vld [vmem:[%s1018_s1 + $0x48] sm:$0xf0]  ;;  %v586_v44 = vld [vmem:[%s1018_s1 + $0xc0] sm:$0xf]  ;;  %v523_v45 = vor.u32 %v654_v40, %v522_v39  ;;  %v670_v46 = vld [vmem:[%s1018_s1 + $0xc4] sm:$0xf0] }
   0xc   :  { %286 = vmatpush.bf16.msra.mxu0 %v531_v28  ;;  %v673_v47 = vld [vmem:[%s1018_s1 + $0xe4] sm:$0xf]  ;;  %v604_v48 = vld [vmem:[%s1018_s1 + $0xe8] sm:$0xf0]  ;;  %v527_v49 = vor.u32 %v653_v42, %v524_v43  ;;  %v514_v50 = vld [vmem:[%s1018_s1 + $0x30] sm:$0xf]  ;;  %v587_v53 = vor.u32 %v670_v46, %v586_v44 }
   0xd   :  { %328 = vmatpush.bf16.msra.mxu3 %v535_v32  ;;  %v652_v51 = vld [vmem:[%s1018_s1 + $0x34] sm:$0xf0]  ;;  %v651_v52 = vld [vmem:[%s1018_s1 + $0x34] sm:$0xf]  ;;  %v516_v54 = vld [vmem:[%s1018_s1 + $0x38] sm:$0xf0]  ;;  %v607_v57 = vor.u32 %v673_v47, %v604_v48 }
   0xe   :  { %319 = vmatpush.bf16.msra.mxu2 %v619_v36  ;;  %300 = vmatpush.bf16.msra.mxu1 %v595_v37  ;;  %v486_v55 = vld [vmem:[%s1017_s0 + $0x8] sm:$0xf]  ;;  %v644_v56 = vld [vmem:[%s1017_s0 + $0x10] sm:$0x10]  ;;  %v578_v59 = vld [vmem:[%s1018_s1 + $0xb0] sm:$0xf]  ;;  %v515_v61 = vor.u32 %v652_v51, %v514_v50  ;;  %v519_v0 = vor.u32 %v651_v52, %v516_v54 }
   0xf   :  { %v867_v58 = vor.u32 %v644_v56, %v486_v55  ;;  %v668_v60 = vld [vmem:[%s1018_s1 + $0xb4] sm:$0xf0]  ;;  %v671_v62 = vld [vmem:[%s1018_s1 + $0xd4] sm:$0xf]  ;;  %v596_v63 = vld [vmem:[%s1018_s1 + $0xd8] sm:$0xf0] }
  0x10   :  { %287 = vmatpush.bf16.msra.mxu0 %v523_v45  ;;  %v506_v1 = vld [vmem:[%s1018_s1 + $0x20] sm:$0xf]  ;;  %v650_v2 = vld [vmem:[%s1018_s1 + $0x24] sm:$0xf0]  ;;  %v579_v3 = vor.u32 %v668_v60, %v578_v59  ;;  %v649_v4 = vld [vmem:[%s1018_s1 + $0x24] sm:$0xf]  ;;  %v599_v6 = vor.u32 %v671_v62, %v596_v63 }
  0x11   :  { %329 = vmatpush.bf16.msra.mxu3 %v527_v49  ;;  %640 = vmatmul.msk.bf16.vlgmr.msra.gmra.mxu2 %vm273_vm1, %v867_v58  ;;  %v508_v5 = vld [vmem:[%s1018_s1 + $0x28] sm:$0xf0]  ;;  %v570_v7 = vld [vmem:[%s1018_s1 + $0xa0] sm:$0xf]  ;;  %v666_v8 = vld [vmem:[%s1018_s1 + $0xa4] sm:$0xf0]  ;;  %v507_v9 = vor.u32 %v650_v2, %v506_v1 }
  0x12   :  { %340 = vmatpush.bf16.msrb.mxu2 %v615_v41  ;;  %301 = vmatpush.bf16.msra.mxu1 %v587_v53  ;;  %v669_v10 = vld [vmem:[%s1018_s1 + $0xc4] sm:$0xf]  ;;  %v588_v11 = vld [vmem:[%s1018_s1 + $0xc8] sm:$0xf0]  ;;  %v511_v12 = vor.u32 %v649_v4, %v508_v5  ;;  %v498_v13 = vld [vmem:[%s1018_s1 + $0x10] sm:$0xf]  ;;  %v571_v15 = vor.u32 %v666_v8, %v570_v7 }
  0x13   :  { %v648_v14 = vld [vmem:[%s1018_s1 + $0x14] sm:$0xf0]  ;;  %v647_v16 = vld [vmem:[%s1018_s1 + $0x14] sm:$0xf]  ;;  %v500_v17 = vld [vmem:[%s1018_s1 + $0x18] sm:$0xf0]  ;;  %v591_v18 = vor.u32 %v669_v10, %v588_v11 }
  0x14   :  { %288 = vmatpush.bf16.msra.mxu0 %v515_v61  ;;  %v562_v19 = vld [vmem:[%s1018_s1 + $0x90] sm:$0xf]  ;;  %v664_v20 = vld [vmem:[%s1018_s1 + $0x94] sm:$0xf0]  ;;  %v499_v21 = vor.u32 %v648_v14, %v498_v13  ;;  %v667_v22 = vld [vmem:[%s1018_s1 + $0xb4] sm:$0xf]  ;;  %v503_v25 = vor.u32 %v647_v16, %v500_v17 }
  0x15   :  { %330 = vmatpush.bf16.msra.mxu3 %v519_v0  ;;  %v580_v23 = vld [vmem:[%s1018_s1 + $0xb8] sm:$0xf0]  ;;  %v490_v24 = vld [vmem:[%s1018_s1] sm:$0xf]  ;;  %v646_v26 = vld [vmem:[%s1018_s1 + $0x4] sm:$0xf0]  ;;  %v563_v29 = vor.u32 %v664_v20, %v562_v19 }
  0x16   :  { %341 = vmatpush.bf16.msrb.mxu2 %v607_v57  ;;  %302 = vmatpush.bf16.msra.mxu1 %v579_v3  ;;  %v645_v27 = vld [vmem:[%s1018_s1 + $0x4] sm:$0xf]  ;;  %v492_v30 = vld [vmem:[%s1018_s1 + $0x8] sm:$0xf0]  ;;  %v554_v31 = vld [vmem:[%s1018_s1 + $0x80] sm:$0xf]  ;;  %v583_v33 = vor.u32 %v667_v22, %v580_v23  ;;  %v491_v38 = vor.u32 %v646_v26, %v490_v24 }
  0x17   :  { %v681_v28 = vld [vmem:[%s1018_s1 + $0x124] sm:$0xf]  ;;  %v636_v32 = vld [vmem:[%s1018_s1 + $0x128] sm:$0x30]  ;;  %v662_v34 = vld [vmem:[%s1018_s1 + $0x84] sm:$0xf0]  ;;  %v495_v42 = vor.u32 %v645_v27, %v492_v30 }
  0x18   :  { %289 = vmatpush.bf16.msra.mxu0 %v507_v9  ;;  %v665_v35 = vld [vmem:[%s1018_s1 + $0xa4] sm:$0xf]  ;;  %v572_v36 = vld [vmem:[%s1018_s1 + $0xa8] sm:$0xf0]  ;;  %v639_v37 = vor.u32 %v681_v28, %v636_v32  ;;  %v478_v39 = vld [vmem:[%s1017_s0] sm:$0xf]  ;;  %v555_v47 = vor.u32 %v662_v34, %v554_v31 }
  0x19   :  { %331 = vmatpush.bf16.msra.mxu3 %v511_v12  ;;  %v643_v40 = vld [vmem:[%s1017_s0 + $0x8] sm:$0x10]  ;;  %v58_v41 = vld [vmem:[%s1019_s2] sm:$0xff]  ;;  %v480_v44 = vld [vmem:[%s1017_s0 + $0xc] sm:$0x10]  ;;  %v721_v46 = vmov 0  }
  0x1a   :  { %342 = vmatpush.bf16.msrb.mxu2 %v599_v6  ;;  %303 = vmatpush.bf16.msra.mxu1 %v571_v15  ;;  %v642_v43 = vld [vmem:[%s1017_s0 + $0x4] sm:$0xf]  ;;  %v679_v45 = vld [vmem:[%s1018_s1 + $0x114] sm:$0xf]  ;;  %v282_v48 = vsel %vm277_vm0, %v639_v37, 0 }
  0x1b   :  { %688 = vset.pattern.permute.xlu0 %v721_v46  ;;  %v628_v49 = vld [vmem:[%s1018_s1 + $0x118] sm:$0xf0] }
  0x1c   :  { %290 = vmatpush.bf16.msra.mxu0 %v499_v21  ;;  %62 = vperm.xlu0 %688, %v58_v41  }
  0x1d   :  { %332 = vmatpush.bf16.msra.mxu3 %v503_v25 }
  0x1e   :  { %343 = vmatpush.bf16.msrb.mxu2 %v591_v18  ;;  %304 = vmatpush.bf16.msra.mxu1 %v563_v29 }
  0x1f   :  { %8 = vsyncpa [#allocation3], 0  ;;  %v575_v50 = vor.u32 %v665_v35, %v572_v36  ;;  %v479_v51 = vor.u32 %v643_v40, %v478_v39  ;;  %v663_v52 = vld [vmem:[%s1018_s1 + $0x94] sm:$0xf]  ;;  %v564_v53 = vld [vmem:[%s1018_s1 + $0x98] sm:$0xf0]  ;;  %v483_v54 = vor.u32 %v642_v43, %v480_v44  ;;  %v631_v55 = vor.u32 %v679_v45, %v628_v49 }
  0x20   :  { %291 = vmatpush.bf16.msra.mxu0 %v491_v38  ;;  %v677_v56 = vld [vmem:[%s1018_s1 + $0x104] sm:$0xf]  ;;  %v620_v57 = vld [vmem:[%s1018_s1 + $0x108] sm:$0xf0]  ;;  %v567_v59 = vor.u32 %v663_v52, %v564_v53  ;;  %v59_v60 = vld [vmem:[%s1019_s2 + $0x8] sm:$0x3] }
  0x21   :  { %333 = vmatpush.bf16.msra.mxu3 %v495_v42  ;;  %v661_v61 = vld [vmem:[%s1018_s1 + $0x84] sm:$0xf]  ;;  %v556_v62 = vld [vmem:[%s1018_s1 + $0x88] sm:$0xf0]  ;;  %v623_v63 = vor.u32 %v677_v56, %v620_v57  ;;  %vm388_vm2 = vcmask 277504   ;;  %vm393_vm3 = vcmask 1041408  }
  0x22   :  { %344 = vmatpush.bf16.msrb.mxu2 %v583_v33  ;;  %305 = vmatpush.bf16.msra.mxu1 %v555_v47  ;;  %v559_v0 = vor.u32 %v661_v61, %v556_v62  ;;  %vm395_vm4 = vcmask 271360   ;;  %s723_s1 = smov [#allocation2]   ;;  %s464_s19 = sshll.u32 %s1020_s3, 4  ;;  %s465_s19 = int_to_ptr.hbm [resolvable:$true] %s464_s19 }
  0x23   :  { %292 = vmatmul.bf16.vlgmr.msra.gmra.mxu0 %v479_v51  ;;  %s462_s2 = sshll.u32 %s723_s1, 4  ;;  %s724_s20 = smov 256   ;;  %s463_s2 = int_to_ptr.vmem [resolvable:$true] %s462_s2 }
  0x24   :  { %359 = vmatpush.bf16.msrb.mxu0 %v282_v48  ;;  %334 = vmatmul.bf16.vlgmr.msra.gmra.mxu3 %v479_v51  ;;  %v722_v51 = vmov 162.0   ;;  %s725_s21 = smov 16  }
  0x25   :  { %306 = vmatmul.bf16.vlgmr.msra.gmra.mxu1 %v483_v54  ;;  %67 = vperm.xlu0 %688, %v59_v60   ;;  %689 = vrcp.f32 %v722_v51 }
  0x26   :  { %345 = vmatpush.bf16.msrb.mxu2 %v575_v50 }
  0x28   :  { %360 = vmatpush.bf16.msrb.mxu0 %v631_v55 }
  0x2a   :  { %346 = vmatpush.bf16.msrb.mxu2 %v567_v59 }
  0x2b   :  { %v690_v52 = vpop.eup %689 }
  0x2c   :  { %361 = vmatpush.bf16.msrb.mxu0 %v623_v63  ;;  %v401_v53 = vmul.f32 162.0, %v690_v52  ;;  %vm405_vm5 = vweird.f32 %v690_v52 }
  0x2e   :  { %347 = vmatpush.bf16.msrb.mxu2 %v559_v0 }
  0x31   :  { %348 = vmatmul.bf16.vlgmr.msrb.gmra.mxu2 %v483_v54  ;;  %v402_v54 = vsub.f32 1.0, %v401_v53 }
  0x33   :  { %641 = vmatmul.msk.bf16.vlgmr.msrb.gmra.mxu0 %vm273_vm1, %v867_v58  ;;  %v403_v55 = vmul.f32 %v690_v52, %v402_v54 }
  0x35   :  { %v404_v56 = vadd.f32 %v690_v52, %v403_v55 }
  0x37   :  { %v406_v57 = vsel %vm405_vm5, %v690_v52, %v404_v56 }
  0x8e   :  { %v63_v1 = vpop.permute.xlu0 %62 }
  0x94   :  { %v321_v2 = vpop.f32.mrf.mxu2 }
  0x97   :  { %v68_v6 = vpop.permute.xlu0 %67 }
  0x9c   :  { %v323_v9 = vpop.f32.mrf.mxu2 }
  0xa0   :  { %v293_v3 = vpop.f32.mrf.mxu0 }
  0xa1   :  { %v294_v5 = vadd.f32 %v293_v3, %v63_v1 }
  0xa2   :  { %v307_v4 = vpop.f32.mrf.mxu1 }
  0xa3   :  { %v308_v7 = vadd.f32 %v307_v4, %v294_v5 }
  0xa5   :  { %v322_v12 = vadd.f32 %v321_v2, %v308_v7 }
  0xa7   :  { %v335_v13 = vpop.f32.mrf.mxu3  ;;  %v368_v16 = vadd.f32 3.0, %v322_v12 }
  0xa8   :  { %v295_v8 = vpop.f32.mrf.mxu0  ;;  %v336_v15 = vadd.f32 %v335_v13, %v63_v1 }
  0xa9   :  { %v296_v10 = vadd.f32 %v295_v8, %v68_v6  ;;  %v372_v20 = vmax.f32 %v368_v16, 0.0 }
  0xaa   :  { %v309_v11 = vpop.f32.mrf.mxu1 }
  0xab   :  { %v310_v14 = vadd.f32 %v309_v11, %v296_v10  ;;  %v376_v25 = vmin.f32 %v372_v20, 6.0 }
  0xad   :  { %v324_v17 = vadd.f32 %v323_v9, %v310_v14  ;;  %v380_v33 = vmul.f32 %v376_v25, %v322_v12 }
  0xaf   :  { %v370_v21 = vadd.f32 3.0, %v324_v17  ;;  %v337_v23 = vpop.f32.mrf.mxu3  ;;  %v384_v39 = vmul.f32 0.16666667, %v380_v33 }
  0xb0   :  { %v363_v19 = vpop.f32.mrf.mxu0  ;;  %v338_v27 = vadd.f32 %v337_v23, %v68_v6 }
  0xb1   :  { %v374_v26 = vmax.f32 %v370_v21, 0.0 }
  0xb3   :  { %v378_v34 = vmin.f32 %v374_v26, 6.0 }
  0xb4   :  { %v349_v18 = vpop.f32.mrf.mxu2 }
  0xb5   :  { %v350_v58 = vadd.f32 %v349_v18, %v336_v15  ;;  %v382_v40 = vmul.f32 %v378_v34, %v324_v17 }
  0xb7   :  { %v364_v22 = vadd.f32 %v363_v19, %v350_v58  ;;  %v386_v46 = vmul.f32 0.16666667, %v382_v40 }
  0xb8   :  { %v365_v32 = vpop.f32.mrf.mxu0 }
  0xb9   :  { %v369_v24 = vadd.f32 3.0, %v364_v22  ;;  %v394_v48 = vsel %vm393_vm3, %v386_v46, 0.0 }
  0xbb   :  { %v373_v28 = vmax.f32 %v369_v24, 0.0 }
  0xbc   :  { %v351_v29 = vpop.f32.mrf.mxu2 }
  0xbd   :  { %v377_v30 = vmin.f32 %v373_v28, 6.0  ;;  %v352_v31 = vadd.f32 %v351_v29, %v338_v27 }
  0xbf   :  { %v381_v35 = vmul.f32 %v377_v30, %v364_v22  ;;  %v366_v36 = vadd.f32 %v365_v32, %v352_v31 }
  0xc1   :  { %v371_v37 = vadd.f32 3.0, %v366_v36  ;;  %v385_v38 = vmul.f32 0.16666667, %v381_v35 }
  0xc3   :  { %v375_v41 = vmax.f32 %v371_v37, 0.0  ;;  %v389_v42 = vsel %vm388_vm2, %v385_v38, 0.0 }
  0xc4   :  { %v390_v43 = vadd.f32 %v389_v42, %v384_v39 }
  0xc5   :  { %v379_v44 = vmin.f32 %v375_v41, 6.0 }
  0xc6   :  { %391 = vadd.xlane.f32.xlu1 %v390_v43 }
  0xc7   :  { %v383_v45 = vmul.f32 %v379_v44, %v366_v36 }
  0xc9   :  { %v387_v47 = vmul.f32 0.16666667, %v383_v45 }
  0xcb   :  { %v396_v49 = vsel %vm395_vm4, %v387_v47, 0.0 }
  0xcc   :  { %v397_v50 = vadd.f32 %v396_v49, %v394_v48 }
  0xce   :  { %398 = vadd.xlane.f32.xlu1 %v397_v50 }
 0x139   :  { %v392_v59 = vpop.xlane.xlu1 %391 }
 0x13a   :  { %v407_v60 = vmul.f32 %v406_v57, %v392_v59 }
 0x13c   :  { %v409_v61 = vsub.f32 %v384_v39, %v407_v60  ;;  %v410_v62 = vsub.f32 %v385_v38, %v407_v60 }
 0x13e   :  { %v413_v63 = vmul.f32 %v409_v61, %v409_v61  ;;  %v414_v0 = vmul.f32 %v410_v62, %v410_v62 }
 0x140   :  { %v417_v1 = vsel %vm388_vm2, %v414_v0, 0.0 }
 0x141   :  { %v399_v2 = vpop.xlane.xlu1 %398  ;;  %v418_v3 = vadd.f32 %v417_v1, %v413_v63 }
 0x142   :  { %v408_v4 = vmul.f32 %v406_v57, %v399_v2 }
 0x143   :  { %419 = vadd.xlane.f32.xlu2 %v418_v3 }
 0x144   :  { %v411_v5 = vsub.f32 %v386_v46, %v408_v4  ;;  %v412_v6 = vsub.f32 %v387_v47, %v408_v4 }
 0x146   :  { %v415_v7 = vmul.f32 %v411_v5, %v411_v5  ;;  %v416_v8 = vmul.f32 %v412_v6, %v412_v6 }
 0x148   :  { %v421_v9 = vsel %vm393_vm3, %v415_v7, 0.0  ;;  %v422_v10 = vsel %vm395_vm4, %v416_v8, 0.0 }
 0x149   :  { %v423_v11 = vadd.f32 %v422_v10, %v421_v9 }
 0x14b   :  { %424 = vadd.xlane.f32.xlu2 %v423_v11 }
 0x1b6   :  { %v420_v12 = vpop.xlane.xlu2 %419 }
 0x1b7   :  { %v426_v13 = vmul.f32 %v420_v12, %v406_v57 }
 0x1b9   :  { %v428_v14 = vadd.f32 1e-05, %v426_v13 }
 0x1bb   :  { %691 = vrsqrt.f32 %v428_v14  ;;  %vm436_vm7 = vweird.f32 %v428_v14 }
 0x1be   :  { %v425_v15 = vpop.xlane.xlu2 %424 }
 0x1bf   :  { %v427_v16 = vmul.f32 %v425_v15, %v406_v57 }
 0x1c1   :  { %v692_v17 = vpop.eup %691  ;;  %v429_v18 = vadd.f32 1e-05, %v427_v16 }
 0x1c2   :  { %v431_v19 = vmul.f32 %v692_v17, %v428_v14  ;;  %vm437_vm6 = vweird.f32 %v692_v17 }
 0x1c3   :  { %693 = vrsqrt.f32 %v429_v18  ;;  %vm438_vm8 = vmor %vm436_vm7, %vm437_vm6  ;;  %vm446_vm10 = vweird.f32 %v429_v18 }
 0x1c4   :  { %v432_v58 = vmul.f32 %v692_v17, %v431_v19 }
 0x1c6   :  { %v433_v20 = vmul.f32 0.5, %v432_v58 }
 0x1c8   :  { %v434_v21 = vsub.f32 1.5, %v433_v20 }
 0x1c9   :  { %v694_v22 = vpop.eup %693 }
 0x1ca   :  { %v435_v23 = vmul.f32 %v692_v17, %v434_v21  ;;  %v441_v24 = vmul.f32 %v694_v22, %v429_v18  ;;  %vm447_vm9 = vweird.f32 %v694_v22 }
 0x1cb   :  { %vm448_vm11 = vmor %vm446_vm10, %vm447_vm9 }
 0x1cc   :  { %v439_v25 = vsel %vm438_vm8, %v692_v17, %v435_v23  ;;  %v442_v26 = vmul.f32 %v694_v22, %v441_v24 }
 0x1cd   :  { %v450_v27 = vmul.f32 %v439_v25, %v409_v61  ;;  %v451_v28 = vmul.f32 %v439_v25, %v410_v62 }
 0x1ce   :  { %v443_v29 = vmul.f32 0.5, %v442_v26 }
 0x1cf   :  { %454 = vst [vmem:[#allocation2] sm:$0xff] %v450_v27 }
 0x1d0   :  { %455 = vst.msk [vmem:[#allocation2 + $0x8] sm:$0xff] %vm388_vm2, %v451_v28  ;;  %v444_v30 = vsub.f32 1.5, %v443_v29 }
 0x1d2   :  { %v445_v31 = vmul.f32 %v694_v22, %v444_v30 }
 0x1d4   :  { %v449_v32 = vsel %vm448_vm11, %v694_v22, %v445_v31 }
 0x1d5   :  { %v452_v33 = vmul.f32 %v449_v32, %v411_v5  ;;  %v453_v34 = vmul.f32 %v449_v32, %v412_v6 }
 0x1d7   :  { %456 = vst [vmem:[#allocation2 + $0x10] sm:$0x3] %v452_v33 }
 0x1d8   :  { %457 = vst.msk [vmem:[#allocation2 + $0x18] sm:$0x3] %vm395_vm4, %v453_v34 }
 0x1d9   :  { %470 = dma.vmem_to_hbm [thread:$0]  %s463_s2, 512, %s465_s19, [#allocation3], %s724_s20, %s724_s20, %s725_s21  }
 0x1da   :  { %719 = dma.done.wait [#allocation3], 512  }
 0x1db   :  { %720 = vsyncadd [#allocation3], 4294966784 }
 0x1dc   :  { %475 = vsyncpa [#allocation3], 1 }

</bundles_post_ra>
